<compile_context>
chip_gen: v6e
topology: v6e:2x2x1
jax: 0.10.0
libtpu: 0.0.40
codegen_flags: <defaults>
</compile_context>

<pallas_src>
import functools

import jax
import jax.numpy as jnp
from jax.experimental import pallas as pl
from jax.experimental.pallas import tpu as pltpu

_MIB = 1024 * 1024


def _vmem_cap_bytes():
    """~75% of physical VMEM (leaves headroom for compiler scratch); 48 MiB fallback."""
    try:
        cap = int(getattr(pltpu.get_tpu_info(), "vmem_capacity_bytes"))
        return (cap * 3) // 4
    except Exception:
        return 48 * _MIB


# --------------------------------------------------------------------------------------
# Single-pass fused kernel (per-block: pool -> packed MLP -> gate apply)
# --------------------------------------------------------------------------------------
def _ca_fused_kernel(x_ref, w1_ref, b1_ref, w2_ref, b2_ref, o_ref, *, hw, inv_hw):
    # x_ref/o_ref: (TB, C, HWp);  w1: (Cr, C);  b1: (Cr, 1);  w2: (C, Cr);  b2: (C, 1)
    tb = x_ref.shape[0]
    hwp = x_ref.shape[-1]
    xf = x_ref[...].astype(jnp.float32)                      # compute in f32 (v5e-safe)

    # Global avg & max pooling over spatial lanes (keepdims keeps C on sublanes).
    s3 = jnp.sum(xf, axis=-1, keepdims=True) * inv_hw        # (TB, C, 1): true-HW average
    if hwp != hw:                                            # exclude zero-padded lanes from max
        lane = jax.lax.broadcasted_iota(jnp.int32, xf.shape, 2)
        xm = jnp.where(lane < hw, xf, -jnp.inf)
    else:
        xm = xf
    m3 = jnp.max(xm, axis=-1, keepdims=True)                 # (TB, C, 1)

    # Pack avg|max into a single (C, 2*TB) operand -> one MXU dot per MLP layer.
    if tb == 1:
        avg = s3[0]                                          # (C, 1)
        mx = m3[0]                                           # (C, 1)
        col = jax.lax.broadcasted_iota(jnp.int32, (avg.shape[0], 2), 1)
        pooled = jnp.where(col == 0, avg, mx)                # (C, 2)
    else:
        avg = jnp.transpose(s3[:, :, 0])                     # (C, TB)
        mx = jnp.transpose(m3[:, :, 0])                      # (C, TB)
        pooled = jnp.concatenate([avg, mx], axis=-1)         # (C, 2*TB)

    # Shared MLP:  (Cr,C)@(C,2TB) -> ReLU -> (C,Cr)@(Cr,2TB) -> sigmoid
    h = jnp.dot(w1_ref[...], pooled, preferred_element_type=jnp.float32) + b1_ref[...]
    h = jnp.maximum(h, 0.0)                                  # (Cr, 2*TB)
    g = jnp.dot(w2_ref[...], h, preferred_element_type=jnp.float32) + b2_ref[...]
    g = jax.nn.sigmoid(g)                                    # (C, 2*TB)

    scale_ct = g[:, :tb] + g[:, tb:]                         # (C, TB): sig(avg)+sig(max)
    if tb == 1:
        o_ref[...] = (xf * scale_ct[None, :, :]).astype(o_ref.dtype)
    else:
        scale = jnp.transpose(scale_ct)[:, :, None]          # (TB, C, 1)
        o_ref[...] = (xf * scale).astype(o_ref.dtype)


# --------------------------------------------------------------------------------------
# Two-phase fallback kernels (large C*HW, v7x 64 MiB VMEM safe)
# --------------------------------------------------------------------------------------
def _ca_reduce_kernel(x_ref, s_ref, acc_ref, *, hw, thw):
    # grid (B, n_t); x block (1, C, THW); stats out block (1, C, 2); acc scratch (C, 2)
    t = pl.program_id(1)

    @pl.when(t == 0)
    def _():
        acc_ref[:, 0:1] = jnp.zeros((acc_ref.shape[0], 1), jnp.float32)
        acc_ref[:, 1:2] = jnp.full((acc_ref.shape[0], 1), -jnp.inf, jnp.float32)

    xf = x_ref[0].astype(jnp.float32)                        # (C, THW)
    lane = jax.lax.broadcasted_iota(jnp.int32, xf.shape, 1) + t * thw
    valid = lane < hw
    xs = jnp.where(valid, xf, 0.0)
    xm = jnp.where(valid, xf, -jnp.inf)
    acc_ref[:, 0:1] = acc_ref[:, 0:1] + jnp.sum(xs, axis=-1, keepdims=True)
    acc_ref[:, 1:2] = jnp.maximum(acc_ref[:, 1:2], jnp.max(xm, axis=-1, keepdims=True))

    @pl.when(t == pl.num_programs(1) - 1)
    def _():
        s_ref[0] = acc_ref[...]


def _ca_apply_kernel(x_ref, scale_ref, o_ref):
    # x/o block (1, C, THW); scale block (1, C, 1)
    xf = x_ref[0].astype(jnp.float32)
    o_ref[0] = (xf * scale_ref[0]).astype(o_ref.dtype)


def _channel_attention_two_phase(x, w1, b1, w2, b2, max_block_bytes, cap):
    B, C, H, W = x.shape
    HW = H * W
    itemsize = jnp.dtype(x.dtype).itemsize

    # Spatial tile: lane-dense (multiple of 128), sized to the per-block budget.
    thw = max(128, (max_block_bytes // (C * itemsize)) // 128 * 128)
    hw_pad = pl.cdiv(HW, thw) * thw
    n_t = hw_pad // thw

    x_flat = x.reshape(B, C, HW)
    if hw_pad != HW:
        x_flat = jnp.pad(x_flat, ((0, 0), (0, 0), (0, hw_pad - HW)))

    block_bytes = C * thw * itemsize
    vmem_limit = int(min(cap, max(16 * _MIB, 4 * block_bytes + 4 * _MIB)))

    # ---- phase 1: pooled (sum, max) stats per (b, c) ----
    stats = pl.pallas_call(
        functools.partial(_ca_reduce_kernel, hw=HW, thw=thw),
        out_shape=jax.ShapeDtypeStruct((B, C, 2), jnp.float32),
        grid_spec=pltpu.PrefetchScalarGridSpec(
            num_scalar_prefetch=0,
            grid=(B, n_t),
            in_specs=[pl.BlockSpec((1, C, thw), lambda b, t: (b, 0, t))],
            out_specs=pl.BlockSpec((1, C, 2), lambda b, t: (b, 0, 0)),
            scratch_shapes=[pltpu.VMEM((C, 2), jnp.float32)],
        ),
        compiler_params=pltpu.CompilerParams(
            dimension_semantics=("parallel", "arbitrary"),
            vmem_limit_bytes=vmem_limit,
        ),
        cost_estimate=pl.CostEstimate(
            flops=int(2 * B * C * hw_pad),
            transcendentals=0,
            bytes_accessed=int(B * C * hw_pad * itemsize + B * C * 2 * 4),
        ),
    )(x_flat)

    # ---- phase 2: tiny shared MLP + sigmoid gate in plain JAX ----
    avg = stats[:, :, 0] * (1.0 / HW)
    mx = stats[:, :, 1]

    def fc(v):
        h = jnp.maximum(v @ w1.T + b1, 0.0)
        return jax.nn.sigmoid(h @ w2.T + b2)

    scale = (fc(avg) + fc(mx)).astype(jnp.float32)[:, :, None]   # (B, C, 1)

    # ---- phase 3: lane-dense elementwise apply (fully parallel 2-D grid) ----
    out_flat = pl.pallas_call(
        _ca_apply_kernel,
        out_shape=jax.ShapeDtypeStruct((B, C, hw_pad), x.dtype),
        grid_spec=pltpu.PrefetchScalarGridSpec(
            num_scalar_prefetch=0,
            grid=(B, n_t),
            in_specs=[
                pl.BlockSpec((1, C, thw), lambda b, t: (b, 0, t)),
                pl.BlockSpec((1, C, 1), lambda b, t: (b, 0, 0)),
            ],
            out_specs=pl.BlockSpec((1, C, thw), lambda b, t: (b, 0, t)),
        ),
        compiler_params=pltpu.CompilerParams(
            dimension_semantics=("parallel", "parallel"),
            vmem_limit_bytes=vmem_limit,
        ),
        cost_estimate=pl.CostEstimate(
            flops=int(B * C * hw_pad),
            transcendentals=0,
            bytes_accessed=int(2 * B * C * hw_pad * itemsize),
        ),
    )(x_flat, scale)

    out = out_flat[:, :, :HW] if hw_pad != HW else out_flat
    return out.reshape(B, C, H, W)


# --------------------------------------------------------------------------------------
# Public wrapper
# --------------------------------------------------------------------------------------
def channel_attention(x, w1, b1, w2, b2, *, max_block_bytes=None):
    """x: (B, C, H, W) f32 or bf16.  PyTorch Linear layouts: w1 (Cr, C), b1 (Cr,),
    w2 (C, Cr), b2 (C,)."""
    B, C, H, W = x.shape
    Cr = w1.shape[0]
    HW = H * W
    itemsize = jnp.dtype(x.dtype).itemsize

    # MLP params always f32 (v5e has no bf16 VPU/EUP; the MLP is tiny anyway).
    w1 = w1.astype(jnp.float32)
    b1 = b1.astype(jnp.float32)
    w2 = w2.astype(jnp.float32)
    b2 = b2.astype(jnp.float32)

    cap = _vmem_cap_bytes()
    if max_block_bytes is None:
        # Bigger blocks on 128-MiB-VMEM parts (v5e/v6e); conservative on v7x (64 MiB).
        max_block_bytes = 16 * _MIB if cap >= 90 * _MIB else 8 * _MIB

    HWp = pl.cdiv(HW, 128) * 128                  # lane-dense last dim
    per_sample_bytes = C * HWp * itemsize

    if per_sample_bytes > max_block_bytes:
        # Large feature map: single blocks would blow v7x VMEM -> two-phase path.
        return _channel_attention_two_phase(x, w1, b1, w2, b2, max_block_bytes, cap)

    # --- batch folding: largest divisor of B within budget, preferring a >=2-step grid ---
    divisors = [d for d in range(1, B + 1)
                if B % d == 0 and d * per_sample_bytes <= max_block_bytes]
    pref = [d for d in divisors if B // d >= 2]
    tb = max(pref) if pref else max(divisors)
    grid_b = B // tb
    block_bytes = tb * per_sample_bytes

    x_flat = x.reshape(B, C, HW)
    if HWp != HW:
        x_flat = jnp.pad(x_flat, ((0, 0), (0, 0), (0, HWp - HW)))   # zero-pad (sum-safe)

    in_bufs = 3 if block_bytes < _MIB else 2
    weight_bytes = (2 * C * Cr + C + Cr) * 4
    vmem_limit = int(min(cap, max(16 * _MIB,
                                  (in_bufs + 2) * block_bytes + weight_bytes + 4 * _MIB)))

    cost = pl.CostEstimate(
        flops=int(3 * B * C * HWp + 8 * B * C * Cr),
        transcendentals=int(2 * B * C),
        bytes_accessed=int(2 * B * C * HWp * itemsize + weight_bytes),
    )

    kernel = functools.partial(_ca_fused_kernel, hw=HW, inv_hw=1.0 / HW)

    def run(x_spec):
        return pl.pallas_call(
            kernel,
            out_shape=jax.ShapeDtypeStruct((B, C, HWp), x.dtype),
            grid_spec=pltpu.PrefetchScalarGridSpec(
                num_scalar_prefetch=0,
                grid=(grid_b,),
                in_specs=[
                    x_spec,
                    pl.BlockSpec((Cr, C), lambda b: (0, 0)),
                    pl.BlockSpec((Cr, 1), lambda b: (0, 0)),
                    pl.BlockSpec((C, Cr), lambda b: (0, 0)),
                    pl.BlockSpec((C, 1), lambda b: (0, 0)),
                ],
                out_specs=pl.BlockSpec((tb, C, HWp), lambda b: (b, 0, 0)),
            ),
            compiler_params=pltpu.CompilerParams(
                dimension_semantics=("parallel",),
                vmem_limit_bytes=vmem_limit,
            ),
            cost_estimate=cost,
        )(x_flat, w1, b1.reshape(Cr, 1), w2, b2.reshape(C, 1))

    plain_spec = pl.BlockSpec((tb, C, HWp), lambda b: (b, 0, 0))
    out_flat = None
    if block_bytes < _MIB:
        # Small blocks: 3-deep input pipeline hides DMA latency behind the tiny compute.
        try:
            deep_spec = pl.BlockSpec((tb, C, HWp), lambda b: (b, 0, 0),
                                     pipeline_mode=pl.Buffered(3))
            out_flat = run(deep_spec)
        except Exception:
            out_flat = None          # fall back to the default 2-deep pipeline
    if out_flat is None:
        out_flat = run(plain_spec)

    if HWp != HW:
        out_flat = out_flat[:, :, :HW]
    return out_flat.reshape(B, C, H, W)


# --------------------------------------------------------------------------------------
# Reference + self-test
# --------------------------------------------------------------------------------------
def _reference(x, w1, b1, w2, b2):
    # Mirrors the PyTorch module: scale = sigmoid(fc(avg)) + sigmoid(fc(max)).
    avg = jnp.mean(x, axis=(2, 3))
    mx = jnp.max(x, axis=(2, 3))

    def fc(v):
        h = jnp.maximum(v @ w1.T + b1, 0.0)
        return jax.nn.sigmoid(h @ w2.T + b2)

    scale = (fc(avg) + fc(mx))[:, :, None, None]
    return x * scale


if __name__ == "__main__":
    def check(x, w1, b1, w2, b2, **kw):
        out = channel_attention(x, w1, b1, w2, b2, **kw)
        jax.block_until_ready(out)
        ref = _reference(x, w1, b1, w2, b2)
        assert out.shape == x.shape
        assert jnp.allclose(out, ref, atol=1e-5, rtol=1e-5), "mismatch vs reference"

    B, C, H, W = 2, 16, 16, 16
    reduction = 8
    Cr = C // reduction

    key = jax.random.PRNGKey(0)
    kx, k1, k2, k3, k4, kx2 = jax.random.split(key, 6)

    x = jax.random.normal(kx, (B, C, H, W), dtype=jnp.float32)
    # PyTorch Linear weight shapes: (out_features, in_features).
    w1 = jax.random.normal(k1, (Cr, C), dtype=jnp.float32) * 0.1
    b1 = jax.random.normal(k2, (Cr,), dtype=jnp.float32) * 0.1
    w2 = jax.random.normal(k3, (C, Cr), dtype=jnp.float32) * 0.1
    b2 = jax.random.normal(k4, (C,), dtype=jnp.float32) * 0.1

    # 1) base case: lane-dense HW (256), fused single pass, batch grid of 2 (megacore-friendly)
    check(x, w1, b1, w2, b2)

    # 2) non-multiple-of-128 spatial size (14x14 = 196 -> zero-padded to 256 lanes,
    #    true-HW average, -inf-masked max)
    x_odd = jax.random.normal(kx2, (B, C, 14, 14), dtype=jnp.float32)
    check(x_odd, w1, b1, w2, b2)

    # 3) large-feature-map / v7x fallback (tiled reduce -> JAX MLP -> parallel apply),
    #    forced here with a tiny per-block budget so it is exercised at small shapes.
    check(x, w1, b1, w2, b2, max_block_bytes=8 * 1024)

    print("KERNEL_OK")
</pallas_src>

<mosaic_0001>
module attributes {stable_mosaic.version = 11 : i64} {
  func.func @_ca_fused_kernel(%arg0: i32, %arg1: memref<1x16x256xf32, #tpu.memory_space<vmem>>, %arg2: memref<2x16xf32, #tpu.memory_space<vmem>>, %arg3: memref<2x1xf32, #tpu.memory_space<vmem>>, %arg4: memref<16x2xf32, #tpu.memory_space<vmem>>, %arg5: memref<16x1xf32, #tpu.memory_space<vmem>>, %arg6: memref<1x16x256xf32, #tpu.memory_space<vmem>>) attributes {dimension_semantics = [#tpu.dimension_semantics<parallel>], iteration_bounds = array<i64: 2>, scalar_prefetch = 0 : i64, scratch_operands = 0 : i64, tpu.core_type = #tpu.core_type<tc>, window_params = [{transform_indices = @transform_0, window_bounds = array<i64: 1, 16, 256>}, {pipeline_mode = #tpu.pipeline_mode<synchronous>, transform_indices = @transform_1, window_bounds = array<i64: 2, 16>}, {pipeline_mode = #tpu.pipeline_mode<synchronous>, transform_indices = @transform_2, window_bounds = array<i64: 2, 1>}, {pipeline_mode = #tpu.pipeline_mode<synchronous>, transform_indices = @transform_3, window_bounds = array<i64: 16, 2>}, {pipeline_mode = #tpu.pipeline_mode<synchronous>, transform_indices = @transform_4, window_bounds = array<i64: 16, 1>}, {transform_indices = @transform_5, window_bounds = array<i64: 1, 16, 256>}]} {
    %c0 = arith.constant 0 : index
    %c0_0 = arith.constant 0 : index
    %c0_1 = arith.constant 0 : index
    %0 = vector.load %arg1[%c0, %c0_0, %c0_1] : memref<1x16x256xf32, #tpu.memory_space<vmem>>, vector<1x16x256xf32>
    %cst = arith.constant dense<0.000000e+00> : vector<1x16xf32>
    %1 = vector.multi_reduction <add>, %0, %cst [2] : vector<1x16x256xf32> to vector<1x16xf32>
    %2 = vector.shape_cast %1 : vector<1x16xf32> to vector<1x16x1xf32>
    %cst_2 = arith.constant 3.906250e-03 : f32
    %3 = vector.broadcast %cst_2 : f32 to vector<1x16x1xf32>
    %4 = arith.mulf %2, %3 : vector<1x16x1xf32>
    %cst_3 = arith.constant dense<0xFF800000> : vector<1x16xf32>
    %5 = vector.multi_reduction <maximumf>, %0, %cst_3 [2] : vector<1x16x256xf32> to vector<1x16xf32>
    %6 = vector.shape_cast %5 : vector<1x16xf32> to vector<1x16x1xf32>
    %7 = vector.shape_cast %4 : vector<1x16x1xf32> to vector<16x1xf32>
    %8 = vector.shape_cast %6 : vector<1x16x1xf32> to vector<16x1xf32>
    %9 = tpu.iota {dimensions = array<i32: 1>} : vector<16x2xi32>
    %c0_i32 = arith.constant 0 : i32
    %10 = vector.broadcast %c0_i32 : i32 to vector<16x2xi32>
    %11 = arith.cmpi eq, %9, %10 : vector<16x2xi32>
    %12 = vector.shape_cast %7 : vector<16x1xf32> to vector<16x1xf32>
    %13 = vector.broadcast %12 : vector<16x1xf32> to vector<16x2xf32>
    %14 = vector.shape_cast %8 : vector<16x1xf32> to vector<16x1xf32>
    %15 = vector.broadcast %14 : vector<16x1xf32> to vector<16x2xf32>
    %16 = arith.select %11, %13, %15 : vector<16x2xi1>, vector<16x2xf32>
    %c0_4 = arith.constant 0 : index
    %c0_5 = arith.constant 0 : index
    %17 = vector.load %arg2[%c0_4, %c0_5] : memref<2x16xf32, #tpu.memory_space<vmem>>, vector<2x16xf32>
    %cst_6 = arith.constant dense<0.000000e+00> : vector<2x2xf32>
    %18 = tpu.matmul %17, %16, %cst_6 {dimension_numbers = #tpu.dot_dimension_numbers<[1], [0], [0], [1], [0, 0, 1, 1], [], []>} : vector<2x16xf32>, vector<16x2xf32>, vector<2x2xf32> -> vector<2x2xf32>
    %c0_7 = arith.constant 0 : index
    %c0_8 = arith.constant 0 : index
    %19 = vector.load %arg3[%c0_7, %c0_8] : memref<2x1xf32, #tpu.memory_space<vmem>>, vector<2x1xf32>
    %20 = vector.broadcast %19 : vector<2x1xf32> to vector<2x2xf32>
    %21 = arith.addf %18, %20 : vector<2x2xf32>
    %cst_9 = arith.constant 0.000000e+00 : f32
    %22 = vector.broadcast %cst_9 : f32 to vector<2x2xf32>
    %23 = arith.maximumf %21, %22 : vector<2x2xf32>
    %c0_10 = arith.constant 0 : index
    %c0_11 = arith.constant 0 : index
    %24 = vector.load %arg4[%c0_10, %c0_11] : memref<16x2xf32, #tpu.memory_space<vmem>>, vector<16x2xf32>
    %cst_12 = arith.constant dense<0.000000e+00> : vector<16x2xf32>
    %25 = tpu.matmul %24, %23, %cst_12 {dimension_numbers = #tpu.dot_dimension_numbers<[1], [0], [0], [1], [0, 0, 1, 1], [], []>} : vector<16x2xf32>, vector<2x2xf32>, vector<16x2xf32> -> vector<16x2xf32>
    %c0_13 = arith.constant 0 : index
    %c0_14 = arith.constant 0 : index
    %26 = vector.load %arg5[%c0_13, %c0_14] : memref<16x1xf32, #tpu.memory_space<vmem>>, vector<16x1xf32>
    %27 = vector.broadcast %26 : vector<16x1xf32> to vector<16x2xf32>
    %28 = arith.addf %25, %27 : vector<16x2xf32>
    %29 = arith.negf %28 : vector<16x2xf32>
    %30 = math.exp %29 : vector<16x2xf32>
    %cst_15 = arith.constant 1.000000e+00 : f32
    %31 = vector.broadcast %cst_15 : f32 to vector<16x2xf32>
    %32 = arith.addf %31, %30 : vector<16x2xf32>
    %33 = arith.divf %31, %32 : vector<16x2xf32>
    %34 = vector.extract_strided_slice %33 {offsets = [0, 0], sizes = [16, 1], strides = [1, 1]} : vector<16x2xf32> to vector<16x1xf32>
    %35 = vector.extract_strided_slice %33 {offsets = [0, 1], sizes = [16, 1], strides = [1, 1]} : vector<16x2xf32> to vector<16x1xf32>
    %36 = arith.addf %34, %35 : vector<16x1xf32>
    %37 = vector.shape_cast %36 : vector<16x1xf32> to vector<1x16x1xf32>
    %38 = vector.broadcast %37 : vector<1x16x1xf32> to vector<1x16x256xf32>
    %39 = arith.mulf %0, %38 : vector<1x16x256xf32>
    %c0_16 = arith.constant 0 : index
    %c0_17 = arith.constant 0 : index
    %c0_18 = arith.constant 0 : index
    %40 = vector.load %arg6[%c0_16, %c0_17, %c0_18] : memref<1x16x256xf32, #tpu.memory_space<vmem>>, vector<1x16x256xf32>
    tpu.vector_store %arg6[%c0_16, %c0_17, %c0_18], %39 {strides = array<i32>} : memref<1x16x256xf32, #tpu.memory_space<vmem>>, vector<1x16x256xf32>,
    return
  }
  func.func @transform_0(%arg0: i32) -> (i32, i32, i32) {
    %c0_i32 = arith.constant 0 : i32
    %c0_i32_0 = arith.constant 0 : i32
    %c0_i32_1 = arith.constant 0 : i32
    return %arg0, %c0_i32, %c0_i32_0 : i32, i32, i32
  }
  func.func @transform_1(%arg0: i32) -> (i32, i32) {
    %c0_i32 = arith.constant 0 : i32
    %c0_i32_0 = arith.constant 0 : i32
    %c0_i32_1 = arith.constant 0 : i32
    return %c0_i32, %c0_i32_0 : i32, i32
  }
  func.func @transform_2(%arg0: i32) -> (i32, i32) {
    %c0_i32 = arith.constant 0 : i32
    %c0_i32_0 = arith.constant 0 : i32
    %c0_i32_1 = arith.constant 0 : i32
    return %c0_i32, %c0_i32_0 : i32, i32
  }
  func.func @transform_3(%arg0: i32) -> (i32, i32) {
    %c0_i32 = arith.constant 0 : i32
    %c0_i32_0 = arith.constant 0 : i32
    %c0_i32_1 = arith.constant 0 : i32
    return %c0_i32, %c0_i32_0 : i32, i32
  }
  func.func @transform_4(%arg0: i32) -> (i32, i32) {
    %c0_i32 = arith.constant 0 : i32
    %c0_i32_0 = arith.constant 0 : i32
    %c0_i32_1 = arith.constant 0 : i32
    return %c0_i32, %c0_i32_0 : i32, i32
  }
  func.func @transform_5(%arg0: i32) -> (i32, i32, i32) {
    %c0_i32 = arith.constant 0 : i32
    %c0_i32_0 = arith.constant 0 : i32
    %c0_i32_1 = arith.constant 0 : i32
    return %arg0, %c0_i32, %c0_i32_0 : i32, i32, i32
  }
}

</mosaic_0001>

<bundles_post_ra>
// kernel: tpu_custom_call.1
= control target key start
LH: loop header
LB: loop body
LE: loop exit
PB: predicated region body
PF: predicated region fallthrough
CT: control target
= control target key end

     0   :  { %10 = vsyncpa [#allocation3], 0  ;;  %s1009_s0 = inlined_call_operand.hbm [shape: f32[2,16,256], index: 0, kind: input, shape index: {}]   ;;  %s1010_s1 = inlined_call_operand.vmem [shape: f32[2,16], index: 1, kind: input, shape index: {}]   ;;  %s1011_s2 = inlined_call_operand.vmem [shape: f32[2,1], index: 2, kind: input, shape index: {}]   ;;  %s1012_s3 = inlined_call_operand.vmem [shape: f32[16,2], index: 3, kind: input, shape index: {}]   ;;  %s1013_s4 = inlined_call_operand.vmem [shape: f32[16,1], index: 4, kind: input, shape index: {}]   ;;  %s1014_s5 = inlined_call_operand.hbm [shape: f32[2,16,256], index: 5, kind: output, shape index: {}]  }
   0x1   :  { %12 = vsyncpa [#allocation3 + $0x1], 0 }
   0x2   :  { %13 = vsyncpa [#allocation4], 0 }
   0x3   :  { %15 = vsyncpa [#allocation4 + $0x1], 0  ;;  %s813_s18 = smov 0   ;;  %s815_s19 = smov 0  }
   0x4   :  { %s817_s20 = smov 0   ;;  %s819_s21 = smov 0  }
   0x5 LB: > { %s834_s22 = sadd.s32 4294967295, %s771_s21   ;;  %s575_s23 = sadd.s32 4294967294, %s771_s21   ;;  %s771_s21 = sphi %s819_s21, %s1029_s21   ;;  %s767_s20 = sphi %s817_s20, %s1028_s20   ;;  %s763_s19 = sphi %s815_s19, %s1027_s19   ;;  %s759_s18 = sphi %s813_s18, %s1026_s18  }
   0x6   : > { %s838_s24 = sadd.s32 1, %s771_s21   ;;  %s28_s25 = sadd.s32 1, %s767_s20 }
   0x7   : > { %s25_s26 = ssub.s32 %s771_s21, %s838_s24  ;;  %p35_p0 = scmp.ne.s32.totalorder %s767_s20, %s763_s19 }
   0x8   : > { %p26_p1 = scmp.eq.s32.totalorder %s25_s26, 0  ;;  %p36_p2 = scmp.eq.s32.totalorder %s771_s21, 0 }
   0x9   : > { %p41_p3 = scmp.ne.s32.totalorder %s763_s19, %s759_s18  ;;  %p42_p4 = scmp.eq.s32.totalorder %s834_s22, 0 }
   0xa   : > { %s850_s27 = scalar_select %p26_p1, %s767_s20, %s28_s25  }
   0xb   : > { %p852_p5 = por %p36_p2, %p35_p0  ;;  %p856_p6 = por %p42_p4, %p41_p3 }
   0xc   : > { %p149_p7 = scmp.eq.s32.totalorder %s834_s22, 1  ;;  %p155_p8 = scmp.eq.s32.totalorder %s575_s23, 1 }
   0xd   : > { %s1018_s29 = scalar_select %p856_p6, 1, 0 }
   0xe   : > { %p627_p10 = scmp.lt.s32.totalorder %s771_s21, 2  ;;  %p863_p11 = por %p149_p7, %p35_p0 }
   0xf   : > { %p867_p12 = por %p155_p8, %p41_p3  ;;  %s187_s7 = sand.u32 1, %s767_s20  }
  0x10   : > { %s1019_s30 = scalar_select %p863_p11, 1, 0 }
  0x11   : > { %s1020_s6 = scalar_select %p867_p12, 1, 0 }
  0x12   : > { %s595_s8 = sshll.u32 %s771_s21, 9  ;;  %s578_s9 = sshll.u32 %s187_s7, 5 }
  0x13   : > { %s876_s12 = scalar_lea.hbm %s1009_s0, %s595_s8  ;;  %s191_s13 = scalar_lea.vmem [#allocation2], %s578_s9 }
  0x14   : > { %s198_s14 = sshll.u32 %s191_s13, 4  ;;  %p880_p13 = pnand %p627_p10, %p852_p5  ;;  %s884_s14 = int_to_ptr.vmem [resolvable:$true] %s198_s14 }
  0x15   : > { %s886_s16 = scalar_lea.sflag [#allocation3], %s187_s7  ;;  %s679_s17 = scalar_lea.hbm %s876_s12, 512 }
  0x16   : > { %p680_p0 = scmp.ne.s32.totalorder %s876_s12, %s679_s17  ;;  %p681_p1 = pneg %p880_p13 }
  0x17   : > { %s684_s26 = scalar_lea.hbm %s1009_s0, 1024  ;;  %p685_p4 = scmp.lt.s32.totalorder %s876_s12, %s1009_s0 }
  0x18   : > { %p682_p2 = pnand %p681_p1, %p680_p0  ;;  %p686_p5 = scmp.lt.s32.totalorder %s684_s26, %s679_s17 }
  0x1a   : > { %p683_p3 = pneg %p682_p2  ;;  %p687_p7 = por %p686_p5, %p685_p4 }
  0x1c   : > { %p688_p8 = pnand %p687_p7, %p683_p3 }
  0x1e   : > { %691 = shalt.err (!%p688_p8)
}
  0x1f   : > { %s692_s7 = scalar_lea.vmem %s884_s14, 512  ;;  %s773_s9 = smov [#allocation2]  }
  0x20   : > { %p693_p10 = scmp.ne.s32.totalorder %s884_s14, %s692_s7  ;;  %s697_s10 = sshll.u32 %s773_s9, 4  ;;  %s698_s10 = int_to_ptr.vmem [resolvable:$false] %s697_s10 }
  0x21   : > { %s699_s11 = scalar_lea.vmem %s698_s10, 1024  ;;  %p700_p2 = scmp.lt.s32.totalorder %s884_s14, %s698_s10 }
  0x22   : > { %p695_p9 = pnand %p693_p10, %p681_p1  ;;  %p701_p12 = scmp.lt.s32.totalorder %s699_s11, %s692_s7 }
  0x24   : > { %p696_p0 = pneg %p695_p9  ;;  %p702_p11 = por %p701_p12, %p700_p2 }
  0x26   : > { %p703_p6 = pnand %p702_p11, %p696_p0 }
  0x28   : > { %706 = shalt.err (!%p703_p6)
}
  0x29   : > { %s774_s13 = smov 256   ;;  %s775_s17 = smov 16  }
  0x2a   : > { %622 = dma.hbm_to_vmem [thread:$0]  (!%p880_p13), %s876_s12, 512, %s884_s14, %s886_s16, %s774_s13, %s774_s13, %s775_s17  }
  0x2b   : > { %p581_p9 = scmp.ge.s32.totalorder %s771_s21, 1  ;;  %p206_p1 = scmp.lt.s32.totalorder %s771_s21, 3 }
  0x2d   : > { %p207_p3 = pnand %p581_p9, %p206_p1 }
  0x2e   : > { %s910_s23 = sand.u32 (!%p207_p3), 1, %s763_s19   ;;  %p1022_p6 = scmp.ne.s32.totalorder (!%p207_p3), %s1018_s29, 0 }
  0x2f   : > { %210 = sbr.rel (%p207_p3) target bundleno = 891 (0x37b), region = 40  ;;  %s582_s25 = sshll.u32 (!%p207_p3), %s910_s23, 5 }
  0x30   : > { %s213_s26 = scalar_lea.sflag (!%p207_p3), [#allocation3], %s910_s23  ;;  %s216_s28 = scalar_lea.vmem (!%p207_p3), [#allocation2], %s582_s25 }
  0x34   : > { %750 = dma.done.wait (%p1022_p6), %s213_s26, 512  }
  0x35   : > { %752 = vsyncadd (%p1022_p6), %s213_s26, 4294966784  ;;  %v920_v0 = vld [vmem:[%s216_s28 + $0x10] sm:$0xff]  ;;  %v922_v1 = vld [vmem:[%s216_s28 + $0x18] sm:$0xff]  ;;  %v776_v8 = vmov 0.0   ;;  %vm777_vm0 = vmmov 0   ;;  %v778_v9 = vmov 0   ;;  %v261_v11 = vlaneseq }
  0x36   : > { %v924_v2 = vld [vmem:[%s216_s28] sm:$0xff]  ;;  %v250_v3 = vadd.f32 %v922_v1, %v920_v0  ;;  %v258_v4 = vmax.f32 %v920_v0, %v922_v1  ;;  %v930_v5 = vld [vmem:[%s216_s28 + $0x8] sm:$0xff]  ;;  %603 = vmatprep.subr.mxu0 %v776_v8  ;;  %607 = vmatprep.mubr.msk.f32.mxu0 %vm777_vm0, %v776_v8  ;;  %vm273_vm2 = vcmask 130048   ;;  %vm362_vm3 = vcmask 15360   ;;  %s779_s26 = smov 127   ;;  %s242_s28 = scalar_lea.vmem [#allocation5], %s582_s25 }
  0x37   : > { %v247_v6 = vadd.f32 %v930_v5, %v924_v2  ;;  %v255_v7 = vmax.f32 %v924_v2, %v930_v5  ;;  %669 = vset.pattern.permute.xlu0 %v778_v9  ;;  %670 = vset.pattern.permute.xlu1 %v778_v9  ;;  %v267_v10 = vld [vmem:[%s1011_s2] sm:$0x3]  ;;  %v262_v12 = vand.u32 127, %v261_v11  ;;  %v351_v24 = vld [vmem:[%s1013_s4 + $0x8] sm:$0xff]  ;;  %vm369_vm4 = vcmask 1041408   ;;  %s502_s29 = sshll.u32 %s242_s28, 4  ;;  %s959_s29 = int_to_ptr.vmem [resolvable:$true] %s502_s29 }
  0x38   : > { %251 = vadd.xlane.f32.xlu0 %v250_v3  ;;  %259 = vmax.xlane.f32.xlu1 %v258_v4  ;;  %v266_v20 = vld [vmem:[%s1010_s1] sm:$0x3]  ;;  %v349_v30 = vld [vmem:[%s1012_s3 + $0x8] sm:$0xff]  ;;  %s596_s12 = sshll.u32 %s834_s22, 9  ;;  %s489_s22 = scalar_lea.sflag [#allocation4], %s910_s23 }
  0x39   : > { %vm263_vm1 = vcmp.eq.s32.totalorder %v262_v12, 0  ;;  %v348_v22 = vld [vmem:[%s1012_s3] sm:$0xff]  ;;  %s964_s25 = scalar_lea.hbm %s1014_s5, %s596_s12  ;;  %s707_s16 = scalar_lea.vmem %s959_s29, 512 }
  0x3a   : > { %612 = vmatprep.mubr.msk.f32.mxu1 %vm362_vm3, %v348_v22  ;;  %v350_v23 = vld [vmem:[%s1013_s4] sm:$0xff]  ;;  %p708_p11 = scmp.ne.s32.totalorder %s959_s29, %s707_s16  ;;  %p1023_p12 = scmp.ne.s32.totalorder %s1019_s30, 0 }
  0x3b   : > { %s780_s8 = smov [#allocation5]  }
  0x3c   : > { %248 = vadd.xlane.f32.xlu0 %v247_v6  ;;  %256 = vmax.xlane.f32.xlu1 %v255_v7  ;;  %p709_p13 = pnand %p708_p11, %p1023_p12  ;;  %s711_s7 = sshll.u32 %s780_s8, 4  ;;  %s712_s7 = int_to_ptr.vmem [resolvable:$false] %s711_s7 }
  0x3d   : > { %s713_s9 = scalar_lea.vmem %s712_s7, 1024  ;;  %p714_p5 = scmp.lt.s32.totalorder %s959_s29, %s712_s7 }
  0x3e   : > { %p710_p4 = pneg %p709_p13  ;;  %p715_p7 = scmp.lt.s32.totalorder %s713_s9, %s707_s16 }
  0x40   : > { %p716_p8 = por %p715_p7, %p714_p5 }
  0x42   : > { %p717_p10 = pnand %p716_p8, %p710_p4 }
  0x4d   : > { %354 = vperm.xlu1 %670, %v350_v23  }
  0x51   : > { %359 = vperm.xlu1 %670, %v351_v24  }
  0x52   : > { %270 = vperm.xlu0 %669, %v267_v10  }
  0xc1   : > { %v252_v13 = vpop.xlane.xlu0 %251  ;;  %v260_v14 = vpop.xlane.xlu1 %259 }
  0xc2   : > { %v254_v15 = vmul.f32 0.00390625, %v252_v13 }
  0xc4   : > { %v265_v16 = vsel %vm263_vm1, %v254_v15, %v260_v14 }
  0xc5   : > { %604 = vmatpush3.msra.mxu0 %v265_v16  ;;  %v249_v17 = vpop.xlane.xlu0 %248  ;;  %v257_v18 = vpop.xlane.xlu1 %256 }
  0xc6   : > { %v253_v19 = vmul.f32 0.00390625, %v249_v17  ;;  %605 = vmatprep.subr.mxu0 %v776_v8 }
  0xc8   : > { %v264_v21 = vsel %vm263_vm1, %v253_v19, %v257_v18 }
  0xc9   : > { %606 = vmatpush3.msra.mxu0 %v264_v21  ;;  %v355_v31 = vpop.permute.xlu1 %354 }
  0xca   : > { %608 = vmatmul.mubr.msk.f32.vlgmr.msra.gmra.mxu0 %vm273_vm2, %v266_v20 }
  0xcd   : > { %v271_v25 = vpop.permute.xlu0 %270  ;;  %v360_v32 = vpop.permute.xlu1 %359 }
 0x18a   : > { %v343_v26 = vpop.f32.mrf.mxu0 }
 0x18b   : > { %v344_v27 = vadd.f32 %v343_v26, %v271_v25 }
 0x18c   : > { %v609_v28 = vpop.f32.mrf.mxu0 }
 0x18d   : > { %v347_v29 = vmax.f32 %v344_v27, 0.0 }
 0x18f   : > { %610 = vmatprep.subr.msk.mxu1 %vm369_vm4, %v347_v29 }
 0x190   : > { %611 = vmatpush3.msk.msra.mxu1 %vm369_vm4, %v347_v29 }
 0x191   : > { %613 = vmatmul.mubr.msk.f32.vlgmr.msra.gmra.mxu1 %vm362_vm3, %v349_v30 }
 0x251   : > { %v614_v33 = vpop.f32.mrf.mxu1 }
 0x252   : > { %v445_v34 = vadd.f32 %v614_v33, %v360_v32 }
 0x253   : > { %v439_v35 = vpop.f32.mrf.mxu1 }
 0x254   : > { %v589_v36 = vmul.f32 -1.442695, %v445_v34  ;;  %v440_v37 = vadd.f32 %v439_v35, %v355_v31 }
 0x256   : > { %v588_v38 = vmul.f32 -1.442695, %v440_v37  ;;  %671 = vpow2.f32 %v589_v36 }
 0x258   : > { %673 = vpow2.f32 %v588_v38 }
 0x263   : > { %v672_v39 = vpop.eup %671 }
 0x264   : > { %v455_v42 = vadd.f32 1.0, %v672_v39 }
 0x265   : > { %v674_v40 = vpop.eup %673 }
 0x266   : > { %v454_v41 = vadd.f32 1.0, %v674_v40 }
 0x268   : > { %675 = vrcp.f32 %v454_v41 }
 0x269   : > { %677 = vrcp.f32 %v455_v42 }
 0x275   : > { %v676_v43 = vpop.eup %675 }
 0x276   : > { %462 = vrot.lane.b32.xlu1 %v676_v43, %s779_s26  ;;  %v678_v44 = vpop.eup %677 }
 0x27a   : > { %464 = vrot.lane.b32.xlu1 %v678_v44, %s779_s26 }
 0x2e8   : > { %v463_v45 = vpop.permute.xlu1 %462 }
 0x2e9   : > { %v468_v46 = vadd.f32 %v676_v43, %v463_v45 }
 0x2eb   : > { %472 = vperm.xlu1 %670, %v468_v46  }
 0x2ec   : > { %v465_v47 = vpop.permute.xlu1 %464 }
 0x2ed   : > { %v469_v48 = vadd.f32 %v678_v44, %v465_v47 }
 0x2ef   : > { %477 = vperm.xlu1 %670, %v469_v48  }
 0x366   : > { %v473_v49 = vpop.permute.xlu1 %472 }
 0x367   : > { %v480_v50 = vmul.f32 %v473_v49, %v924_v2  ;;  %v481_v51 = vmul.f32 %v473_v49, %v930_v5 }
 0x369   : > { %484 = vst [vmem:[%s242_s28] sm:$0xff] %v480_v50  ;;  %485 = vst [vmem:[%s242_s28 + $0x8] sm:$0xff] %v481_v51 }
 0x36a   : > { %v478_v52 = vpop.permute.xlu1 %477 }
 0x36b   : > { %v482_v53 = vmul.f32 %v478_v52, %v920_v0  ;;  %v483_v54 = vmul.f32 %v478_v52, %v922_v1 }
 0x36d   : > { %486 = vst [vmem:[%s242_s28 + $0x10] sm:$0xff] %v482_v53  ;;  %487 = vst [vmem:[%s242_s28 + $0x18] sm:$0xff] %v483_v54 }
 0x36e   : > { %720 = shalt.err (!%p717_p10)
}
 0x36f   : > { %s721_s10 = scalar_lea.hbm %s964_s25, 512  ;;  %s725_s17 = scalar_lea.hbm %s1014_s5, 1024 }
 0x370   : > { %p722_p0 = scmp.ne.s32.totalorder %s964_s25, %s721_s10  ;;  %p726_p1 = scmp.lt.s32.totalorder %s964_s25, %s1014_s5 }
 0x371   : > { %p727_p3 = scmp.lt.s32.totalorder %s725_s17, %s721_s10 }
 0x372   : > { %p723_p2 = pnand %p722_p0, %p1023_p12 }
 0x373   : > { %p728_p6 = por %p727_p3, %p726_p1 }
 0x374   : > { %p724_p9 = pneg %p723_p2 }
 0x376   : > { %p729_p11 = pnand %p728_p6, %p724_p9 }
 0x378   : > { %732 = shalt.err (!%p729_p11)
}
 0x379   : > { %s781_s12 = smov 256   ;;  %s782_s14 = smov 16  }
 0x37a   : > { %617 = dma.vmem_to_hbm [thread:$0]  (%p1023_p12), %s959_s29, 512, %s964_s25, %s489_s22, %s781_s12, %s781_s12, %s782_s14  }
 0x37b PF: > { %s517_s15 = sand.u32 1, %s759_s18   ;;  %p1024_p13 = scmp.ne.s32.totalorder %s1020_s6, 0 }
 0x37c   : > { %p1025_p4 = scmp.ge.s32.totalorder %s771_s21, 2  ;;  %s518_s16 = scalar_lea.sflag [#allocation4], %s517_s15 }
 0x37e   : > { %p624_p5 = pnand %p1025_p4, %p1024_p13 }
 0x380   : > { %p625_p7 = pneg %p624_p5 }
 0x382   : > { %754 = dma.done.wait (%p625_p7), %s518_s16, 512  }
 0x383   : > { %756 = vsyncadd (%p625_p7), %s518_s16, 4294966784  ;;  %p18_p8 = scmp.ge.s32.totalorder %s838_s24, 4   ;;  %s1026_s18 = smov %s763_s19 }
 0x384   : > { %s1027_s19 = smov %s767_s20  ;;  %s1028_s20 = smov %s850_s27 }
 0x385   : > { %s1029_s21 = smov %s838_s24  ;;  %20 = sbr.rel (!%p18_p8) target bundleno = 5 (0x5), region = 85 }
 0x38a   :  { %523 = vsyncpa [#allocation3], 1 }
 0x38b   :  { %525 = vsyncpa [#allocation3 + $0x1], 1 }
 0x38c   :  { %526 = vsyncpa [#allocation4], 1 }
 0x38d   :  { %528 = vsyncpa [#allocation4 + $0x1], 1 }

</bundles_post_ra>
